<compile_context>
chip_gen: v5e
topology: v5e:2x2
jax: 0.10.0
libtpu: 0.0.40
codegen_flags: <defaults>
</compile_context>

<pallas_src>
import jax
import jax.numpy as jnp
from jax.experimental import pallas as pl
from jax.experimental.pallas import tpu as pltpu


_LANE_CANDIDATES = (8192, 4096, 2048, 1024, 512, 256, 128)


def _sin_kernel(params_ref, x_ref, o_ref):
    # params_ref (SMEM, f32): params_ref[0] = a, params_ref[1] = b
    a = params_ref[0]
    b = params_ref[1]
    x = x_ref[...].astype(jnp.float32)          # compute in f32 for any input dtype
    o_ref[...] = (a * jnp.sin(b * x)).astype(o_ref.dtype)


def _choose_tiles(n_main: int, itemsize: int, target_block_bytes: int):
    """Pick (R, C, tr): lane width C, row count R = n_main // C, row tile tr."""
    # Widest lane dim (multiple of 128) dividing n_main, preferring one that
    # leaves enough rows (>= 16) for a >=2-step grid (2-TC / megacore split).
    fallback_c = None
    C = None
    for cand in _LANE_CANDIDATES:
        if n_main % cand == 0:
            if fallback_c is None:
                fallback_c = cand
            if n_main // cand >= 16:
                C = cand
                break
    if C is None:
        C = fallback_c
    R = n_main // C

    if R <= 8:
        return R, C, R                           # tiny input: single full-extent block

    # Rows per block from the ~target_block_bytes budget (multiple of 8 rows).
    tr_budget = max(8, ((target_block_bytes // itemsize) // C) // 8 * 8)
    # Cap so the grid has >= 2 steps (v7x has 2 TensorCores per chip).
    tr_cap = max(8, min(tr_budget, (R // 2) // 8 * 8))
    # Largest multiple of 8 <= tr_cap that divides R exactly (even split, no
    # masked edge tile); otherwise accept one ragged last block.
    tr = None
    for d in range(tr_cap, 7, -8):
        if R % d == 0:
            tr = d
            break
    if tr is None:
        tr = tr_cap
    return R, C, tr


def sin_model(x: jax.Array, a: jax.Array, b: jax.Array,
              *, target_block_bytes: int = 4 * 1024 * 1024) -> jax.Array:
    """Computes a * sin(b * x) with a Pallas TPU kernel. x may be any shape."""
    orig_shape = x.shape
    dtype = x.dtype
    itemsize = jnp.dtype(dtype).itemsize
    n = int(x.size)

    a32 = jnp.asarray(a, dtype=jnp.float32)
    b32 = jnp.asarray(b, dtype=jnp.float32)

    flat = x.reshape(-1)
    n_main = (n // 128) * 128
    n_tail = n - n_main

    if n_main == 0:
        # Fewer than 128 elements: a kernel launch is pure overhead.
        y = (a32 * jnp.sin(b32 * flat.astype(jnp.float32))).astype(dtype)
        return y.reshape(orig_shape)

    R, C, tr = _choose_tiles(n_main, itemsize, target_block_bytes)
    x2 = flat[:n_main].reshape(R, C)
    params = jnp.stack([a32, b32])               # f32 scalars -> SMEM

    y2 = pl.pallas_call(
        _sin_kernel,
        out_shape=jax.ShapeDtypeStruct((R, C), dtype),
        grid=(pl.cdiv(R, tr),),
        in_specs=[
            pl.BlockSpec(memory_space=pltpu.MemorySpace.SMEM),   # [a, b]
            pl.BlockSpec((tr, C), lambda i: (i, 0)),             # lane-dense X block
        ],
        out_specs=pl.BlockSpec((tr, C), lambda i: (i, 0)),
        compiler_params=pltpu.CompilerParams(
            dimension_semantics=("parallel",),                   # 2-TC / megacore sharding
            vmem_limit_bytes=32 * 1024 * 1024,
        ),
        cost_estimate=pl.CostEstimate(
            flops=2 * n_main,
            transcendentals=n_main,
            bytes_accessed=2 * n_main * itemsize,
        ),
    )(params, x2)

    y_flat = y2.reshape(-1)
    if n_tail:
        # <=127-element tail handled in plain jnp (replaces the old pad + slice,
        # each of which was a full extra HBM pass).
        y_tail = (a32 * jnp.sin(b32 * flat[n_main:].astype(jnp.float32))).astype(dtype)
        y_flat = jnp.concatenate([y_flat, y_tail])
    return y_flat.reshape(orig_shape)


if __name__ == "__main__":
    key = jax.random.PRNGKey(0)

    # Parameters as in the PyTorch module: nn.Parameter(torch.tensor(1.0))
    a = jnp.array(1.0, dtype=jnp.float32)
    b = jnp.array(1.0, dtype=jnp.float32)

    # Small 4-D input (the module accepts any tensor shape).
    x = jax.random.normal(key, (2, 4, 16, 16), dtype=jnp.float32)

    y = jax.block_until_ready(sin_model(x, a, b))
    ref = a * jnp.sin(b * x)
    assert y.shape == x.shape and y.dtype == x.dtype
    assert jnp.allclose(y, ref, atol=1e-5, rtol=1e-5)

    # Non-unit params + a ragged (non-multiple-of-128) shape exercises the
    # prefix-kernel + jnp-tail path (no pad / slice HBM passes).
    a2 = jnp.array(0.5, dtype=jnp.float32)
    b2 = jnp.array(2.0, dtype=jnp.float32)
    x2 = jax.random.normal(jax.random.PRNGKey(1), (7, 33), dtype=jnp.float32)
    y2 = jax.block_until_ready(sin_model(x2, a2, b2))
    ref2 = a2 * jnp.sin(b2 * x2)
    assert y2.shape == x2.shape and y2.dtype == x2.dtype
    assert jnp.allclose(y2, ref2, atol=1e-5, rtol=1e-5)

    print("KERNEL_OK")
</pallas_src>

<mosaic_0001>
module attributes {stable_mosaic.version = 11 : i64} {
  func.func @_sin_kernel(%arg0: i32, %arg1: memref<2xf32, #tpu.memory_space<smem>>, %arg2: memref<8x128xf32, #tpu.memory_space<vmem>>, %arg3: memref<8x128xf32, #tpu.memory_space<vmem>>) attributes {dimension_semantics = [#tpu.dimension_semantics<parallel>], iteration_bounds = array<i64: 2>, scalar_prefetch = 0 : i64, scratch_operands = 0 : i64, tpu.core_type = #tpu.core_type<tc>, window_params = [{transform_indices = @transform_0, window_bounds = array<i64: 2>}, {transform_indices = @transform_1, window_bounds = array<i64: 8, 128>}, {transform_indices = @transform_2, window_bounds = array<i64: 8, 128>}]} {
    %c0 = arith.constant 0 : index
    %0 = memref.load %arg1[%c0] : memref<2xf32, #tpu.memory_space<smem>>
    %c1 = arith.constant 1 : index
    %1 = memref.load %arg1[%c1] : memref<2xf32, #tpu.memory_space<smem>>
    %c0_0 = arith.constant 0 : index
    %c0_1 = arith.constant 0 : index
    %2 = vector.load %arg2[%c0_0, %c0_1] : memref<8x128xf32, #tpu.memory_space<vmem>>, vector<8x128xf32>
    %3 = vector.broadcast %1 : f32 to vector<8x128xf32>
    %4 = arith.mulf %3, %2 : vector<8x128xf32>
    %5 = math.sin %4 : vector<8x128xf32>
    %6 = vector.broadcast %0 : f32 to vector<8x128xf32>
    %7 = arith.mulf %6, %5 : vector<8x128xf32>
    %c0_2 = arith.constant 0 : index
    %c0_3 = arith.constant 0 : index
    %8 = vector.load %arg3[%c0_2, %c0_3] : memref<8x128xf32, #tpu.memory_space<vmem>>, vector<8x128xf32>
    tpu.vector_store %arg3[%c0_2, %c0_3], %7 {strides = array<i32>} : memref<8x128xf32, #tpu.memory_space<vmem>>, vector<8x128xf32>,
    return
  }
  func.func @transform_0(%arg0: i32) -> i32 {
    %c0_i32 = arith.constant 0 : i32
    %c0_i32_0 = arith.constant 0 : i32
    return %c0_i32 : i32
  }
  func.func @transform_1(%arg0: i32) -> (i32, i32) {
    %c0_i32 = arith.constant 0 : i32
    %c0_i32_0 = arith.constant 0 : i32
    return %arg0, %c0_i32 : i32, i32
  }
  func.func @transform_2(%arg0: i32) -> (i32, i32) {
    %c0_i32 = arith.constant 0 : i32
    %c0_i32_0 = arith.constant 0 : i32
    return %arg0, %c0_i32 : i32, i32
  }
}

</mosaic_0001>

<bundles_post_ra>
// kernel: tpu_custom_call.1
= control target key start
LH: loop header
LB: loop body
LE: loop exit
PB: predicated region body
PF: predicated region fallthrough
CT: control target
= control target key end

     0   :  { %7 = vsyncpa [#allocation5], 0  ;;  %s846_s0 = inlined_call_operand.hbm [shape: f32[2], index: 0, kind: input, shape index: {}]   ;;  %s847_s1 = inlined_call_operand.hbm [shape: f32[16,128], index: 1, kind: input, shape index: {}]   ;;  %s848_s2 = inlined_call_operand.hbm [shape: f32[16,128], index: 2, kind: output, shape index: {}]  }
   0x1   :  { %8 = vsyncpa [#allocation3], 0 }
   0x2   :  { %10 = vsyncpa [#allocation3 + $0x1], 0 }
   0x3   :  { %11 = vsyncpa [#allocation4], 0 }
   0x4   :  { %13 = vsyncpa [#allocation4 + $0x1], 0  ;;  %s658_s9 = smov 0   ;;  %s660_s10 = smov 0  }
   0x5   :  { %s662_s11 = smov 0   ;;  %s664_s12 = smov 0  }
   0x6 LB: > { %s679_s13 = sadd.s32 4294967295, %s633_s12   ;;  %s436_s14 = sadd.s32 4294967294, %s633_s12   ;;  %s633_s12 = sphi %s664_s12, %s858_s12   ;;  %s629_s11 = sphi %s662_s11, %s857_s11   ;;  %s625_s10 = sphi %s660_s10, %s856_s10   ;;  %s621_s9 = sphi %s658_s9, %s855_s9  }
   0x7   : > { %p60_p0 = scmp.ne.s32.totalorder %s625_s10, %s621_s9  ;;  %p61_p1 = scmp.eq.s32.totalorder %s679_s13, 0 }
   0x8   : > { %p84_p2 = scmp.eq.s32.totalorder %s679_s13, 1  ;;  %p90_p3 = scmp.eq.s32.totalorder %s436_s14, 1 }
   0x9   : > { %p688_p4 = por %p61_p1, %p60_p0  ;;  %p437_p5 = scmp.ge.s32.totalorder %s633_s12, 1 }
   0xa   : > { %p693_p6 = por %p90_p3, %p60_p0  ;;  %p97_p7 = scmp.lt.s32.totalorder %s633_s12, 3 }
   0xb   : > { %s109_s19 = sshll.u32 %s846_s0, 4  ;;  %s709_s21 = sadd.s32 1, %s633_s12   ;;  %s110_s19 = int_to_ptr.hbm [resolvable:$true] %s109_s19 }
   0xc   : > { %p701_p8 = pnand %p437_p5, %p97_p7  ;;  %s44_s22 = ssub.s32 %s633_s12, %s709_s21 }
   0xd   : > { %p45_p12 = scmp.eq.s32.totalorder %s44_s22, 0  ;;  %s47_s23 = sadd.s32 1, %s629_s11 }
   0xe   : > { %p462_p10 = pneg %p701_p8  ;;  %p54_p13 = scmp.ne.s32.totalorder %s629_s11, %s625_s10 }
   0xf   : > { %s635_s24 = smov [#allocation2]   ;;  %p55_p0 = scmp.eq.s32.totalorder %s633_s12, 0 }
  0x10   : > { %p463_p11 = pnand %p462_p10, %p61_p1  ;;  %p724_p3 = por %p84_p2, %p54_p13 }
  0x11   : > { %s719_s25 = scalar_select %p45_p12, %s629_s11, %s47_s23  }
  0x12   : > { %465 = dma.hbm_to_smem (!%p463_p11), %s110_s19, 16, %s635_s24, [#allocation5]  }
  0x13   : > { %s120_s27 = sand.u32 1, %s629_s11   ;;  %p56_p5 = por %p55_p0, %p54_p13 }
  0x14   : > { %p475_p7 = scmp.lt.s32.totalorder %s633_s12, 2  ;;  %s440_s28 = sshll.u32 %s120_s27, 3 }
  0x15   : > { %s441_s29 = sshll.u32 %s633_s12, 3  ;;  %s124_s6 = scalar_lea.vmem [#allocation6], %s440_s28 }
  0x16   : > { %s128_s4 = scalar_lea.hbm %s847_s1, %s441_s29  ;;  %s132_s7 = sshll.u32 %s124_s6, 4  ;;  %s133_s7 = int_to_ptr.vmem [resolvable:$true] %s132_s7 }
  0x17   : > { %s130_s5 = sshll.u32 %s128_s4, 4  ;;  %p734_p10 = pnand %p475_p7, %p56_p5  ;;  %s131_s5 = int_to_ptr.hbm [resolvable:$true] %s130_s5 }
  0x18   : > { %s121_s14 = scalar_lea.sflag [#allocation3], %s120_s27  ;;  %s533_s17 = sshra.s32 %s131_s5, 4  ;;  %s534_s17 = int_to_ptr.hbm [resolvable:$true] %s533_s17 }
  0x19   : > { %s535_s18 = scalar_lea.hbm %s534_s17, 8  ;;  %p537_p11 = pneg %p734_p10 }
  0x1a   : > { %p536_p2 = scmp.ne.s32.totalorder %s534_s17, %s535_s18  ;;  %s540_s23 = scalar_lea.hbm %s847_s1, 16 }
  0x1b   : > { %p541_p0 = scmp.lt.s32.totalorder %s534_s17, %s847_s1  ;;  %p542_p5 = scmp.lt.s32.totalorder %s540_s23, %s535_s18 }
  0x1c   : > { %p538_p12 = pnand %p537_p11, %p536_p2 }
  0x1d   : > { %p543_p7 = por %p542_p5, %p541_p0 }
  0x1e   : > { %p539_p13 = pneg %p538_p12 }
  0x20   : > { %p544_p9 = pnand %p543_p7, %p539_p13 }
  0x22   : > { %547 = shalt.err (!%p544_p9)
}
  0x23   : > { %469 = dma.hbm_to_vmem [thread:$0]  (!%p734_p10), %s131_s5, 128, %s133_s7, %s121_s14  }
  0x24   : > { %141 = sbr.rel (%p701_p8) target bundleno = 158 (0x9e), region = 28 }
  0x29   : > { %608 = dma.done.wait (%p61_p1), [#allocation5], 16  }
  0x2a   : > { %610 = vsyncadd (%p61_p1), [#allocation5], 4294967280  ;;  %s755_s27 = sand.u32 1, %s625_s10  }
  0x2b   : > { %s444_s29 = sshll.u32 %s755_s27, 3  ;;  %s149_s30 = scalar_lea.sflag [#allocation3], %s755_s27 }
  0x2c   : > { %s152_s3 = scalar_lea.vmem [#allocation6], %s444_s29 }
  0x2d   : > { %612 = dma.done.wait (%p688_p4), %s149_s30, 128  }
  0x2e   : > { %614 = vsyncadd (%p688_p4), %s149_s30, 4294967168 }
  0x2f   : > { %158 = sfence }
  0x30   : > { %s446_s20 = sld [smem:[#allocation2 + $0x1]]  ;;  %v177_v0 = vld [vmem:[%s152_s3] sm:$0xff]  ;;  %v636_v14 = vmov 683565275   ;;  %v637_v16 = vmov 2475754826  }
  0x31   : > { %v638_v18 = vmov 2131351028   ;;  %v639_v20 = vmov 2102212464   ;;  %v640_v22 = vmov 920167782  }
  0x32   : > { %v641_v28 = vmov 1326507024   ;;  %s175_s15 = sld [smem:[#allocation2]]  ;;  %s451_s4 = sshll.u32 %s679_s13, 3 }
  0x33   : > { %s349_s7 = scalar_lea.hbm %s848_s2, %s451_s4  ;;  %s174_s8 = scalar_lea.vmem [#allocation7], %s444_s29 }
  0x34   : > { %s351_s13 = sshll.u32 %s174_s8, 4  ;;  %s353_s14 = sshll.u32 %s349_s7, 4  ;;  %s352_s13 = int_to_ptr.vmem [resolvable:$true] %s351_s13  ;;  %s354_s14 = int_to_ptr.hbm [resolvable:$true] %s353_s14 }
  0x35   : > { %s339_s17 = scalar_lea.sflag [#allocation4], %s755_s27  ;;  %s577_s18 = sshra.s32 %s354_s14, 4  ;;  %s578_s18 = int_to_ptr.hbm [resolvable:$true] %s577_s18 }
  0x36   : > { %v178_v1 = vstv %s446_s20  ;;  %s579_s19 = scalar_lea.hbm %s578_s18, 8  ;;  %s583_s24 = scalar_lea.hbm %s848_s2, 16 }
  0x37   : > { %v765_v2 = vmul.f32 %v178_v1, %v177_v0  ;;  %p580_p1 = scmp.ne.s32.totalorder %s578_s18, %s579_s19  ;;  %p584_p9 = scmp.lt.s32.totalorder %s578_s18, %s848_s2 }
  0x38   : > { %p585_p10 = scmp.lt.s32.totalorder %s583_s24, %s579_s19 }
  0x39   : > { %v183_v3 = vand.u32 2139095040, %v765_v2  ;;  %v180_v5 = vand.u32 2147483647, %v765_v2  ;;  %vm182_vm12 = vcmp.lt.s32.totalorder %v765_v2, 0  ;;  %p581_p4 = pnand %p580_p1, %p724_p3 }
  0x3a   : > { %p586_p2 = por %p585_p10, %p584_p9 }
  0x3b   : > { %v184_v4 = vshrl.u32 %v183_v3, 23  ;;  %v187_v8 = vand.u32 8388607, %v180_v5  ;;  %v642_v3 = vmov 0   ;;  %vm181_vm13 = vcmp.le.f32.partialorder %v180_v5, 0.7853982  ;;  %p582_p8 = pneg %p581_p4 }
  0x3d   : > { %v447_v6 = vadd.s32 4294967169, %v184_v4  ;;  %v188_v11 = vor.u32 8388608, %v187_v8  ;;  %p587_p11 = pnand %p586_p2, %p582_p8 }
  0x3f   : > { %v190_v7 = vadd.s32 1, %v447_v6  ;;  %v774_v30 = vshll.u32 %v188_v11, 8 }
  0x41   : > { %vm191_vm0 = vcmp.gt.s32.totalorder %v190_v7, 0  ;;  %v229_v42 = vand.u32 65535, %v774_v30  ;;  %v230_v43 = vshrl.u32 %v774_v30, 16 }
  0x42   : > { %v192_v9 = vsel %vm191_vm0, %v190_v7, 0 }
  0x43   : > { %v194_v10 = vand.u32 31, %v192_v9  ;;  %v771_v12 = vshrl.u32 %v192_v9, 5 }
  0x45   : > { %v195_v13 = vsub.s32 32, %v194_v10  ;;  %v197_v15 = vshll.u32 %v636_v14, %v194_v10  ;;  %v200_v17 = vshll.u32 %v637_v16, %v194_v10  ;;  %v203_v19 = vshll.u32 %v638_v18, %v194_v10 }
  0x46   : > { %v206_v21 = vshll.u32 %v639_v20, %v194_v10  ;;  %v209_v23 = vshll.u32 %v640_v22, %v194_v10  ;;  %vm212_vm1 = vcmp.lt.s32.totalorder %v771_v12, 1  ;;  %vm215_vm2 = vcmp.lt.s32.totalorder %v771_v12, 4 }
  0x47   : > { %v198_v24 = vshrl.u32 %v637_v16, %v195_v13  ;;  %v201_v25 = vshrl.u32 %v638_v18, %v195_v13  ;;  %v204_v26 = vshrl.u32 %v639_v20, %v195_v13  ;;  %v207_v27 = vshrl.u32 %v640_v22, %v195_v13 }
  0x48   : > { %v210_v29 = vshrl.u32 %v641_v28, %v195_v13  ;;  %vm214_vm3 = vcmp.lt.s32.totalorder %v771_v12, 3  ;;  %vm213_vm4 = vcmp.lt.s32.totalorder %v771_v12, 2  ;;  %v196_v50 = vshrl.u32 %v636_v14, %v195_v13 }
  0x49   : > { %v199_v31 = vor.u32 %v198_v24, %v197_v15  ;;  %v202_v32 = vor.u32 %v201_v25, %v200_v17  ;;  %v205_v33 = vor.u32 %v204_v26, %v203_v19  ;;  %v208_v34 = vor.u32 %v207_v27, %v206_v21 }
  0x4a   : > { %v211_v35 = vor.u32 %v210_v29, %v209_v23 }
  0x4b   : > { %v220_v36 = vsel %vm212_vm1, %v199_v31, %v202_v32  ;;  %v224_v37 = vsel %vm212_vm1, %v202_v32, %v205_v33  ;;  %v221_v38 = vsel %vm215_vm2, %v208_v34, 920167782  ;;  %v216_v63 = vsel %vm212_vm1, %v196_v50, %v199_v31 }
  0x4c   : > { %v225_v39 = vsel %vm215_vm2, %v211_v35, 1326507024  ;;  %v222_v40 = vsel %vm214_vm3, %v205_v33, %v221_v38  ;;  %v217_v1 = vsel %vm215_vm2, %v205_v33, 2102212464  ;;  %vm323_vm1 = vweird.f32 %v765_v2 }
  0x4d   : > { %v226_v41 = vsel %vm214_vm3, %v208_v34, %v225_v39  ;;  %v223_v44 = vsel %vm213_vm4, %v220_v36, %v222_v40  ;;  %v218_v14 = vsel %vm214_vm3, %v202_v32, %v217_v1 }
  0x4e   : > { %v227_v45 = vsel %vm213_vm4, %v224_v37, %v226_v41  ;;  %v253_v48 = vand.u32 65535, %v223_v44  ;;  %v254_v49 = vshrl.u32 %v223_v44, 16  ;;  %v219_v22 = vsel %vm213_vm4, %v216_v63, %v218_v14 }
  0x4f   : > { %v231_v46 = vand.u32 65535, %v227_v45  ;;  %v232_v47 = vshrl.u32 %v227_v45, 16  ;;  %v273_v26 = vmul.u32 %v774_v30, %v219_v22  ;;  %v335_v14 = vstv %s175_s15 }
  0x50   : > { %v255_v54 = vmul.u32 %v253_v48, %v229_v42  ;;  %v256_v55 = vmul.u32 %v254_v49, %v229_v42  ;;  %v257_v56 = vmul.u32 %v253_v48, %v230_v43  ;;  %v258_v60 = vmul.u32 %v254_v49, %v230_v43 }
  0x51   : > { %v233_v51 = vmul.u32 %v231_v46, %v229_v42  ;;  %v234_v52 = vmul.u32 %v232_v47, %v229_v42  ;;  %v235_v53 = vmul.u32 %v231_v46, %v230_v43  ;;  %v236_v57 = vmul.u32 %v232_v47, %v230_v43 }
  0x52   : > { %v259_v61 = vshll.u32 %v256_v55, 16  ;;  %v261_v62 = vshll.u32 %v257_v56, 16  ;;  %v260_v11 = vshrl.u32 %v256_v55, 16  ;;  %v262_v18 = vshrl.u32 %v257_v56, 16 }
  0x53   : > { %v237_v58 = vshll.u32 %v234_v52, 16  ;;  %v239_v59 = vshll.u32 %v235_v53, 16  ;;  %v238_v7 = vshrl.u32 %v234_v52, 16  ;;  %v240_v15 = vshrl.u32 %v235_v53, 16 }
  0x54   : > { %vm263_vm6 = vc.u32 %v255_v54, %v259_v61  ;;  %v265_v6 = vadd.s32 %v259_v61, %v255_v54 }
  0x55   : > { %vm241_vm5 = vc.u32 %v233_v51, %v237_v58  ;;  %v243_v0 = vadd.s32 %v237_v58, %v233_v51  ;;  %v264_v9 = vsel %vm263_vm6, 1, %v642_v3 }
  0x56   : > { %v242_v4 = vsel %vm241_vm5, 1, %v642_v3  ;;  %v266_v13 = vadd.s32 %v264_v9, %v258_v60  ;;  %vm267_vm8 = vc.u32 %v265_v6, %v261_v62  ;;  %v269_v21 = vadd.s32 %v265_v6, %v261_v62 }
  0x57   : > { %v244_v8 = vadd.s32 %v242_v4, %v236_v57  ;;  %vm245_vm7 = vc.u32 %v243_v0, %v239_v59  ;;  %v268_v17 = vsel %vm267_vm8, 1, %v642_v3 }
  0x58   : > { %v246_v10 = vsel %vm245_vm7, 1, %v642_v3  ;;  %v270_v19 = vadd.s32 %v268_v17, %v266_v13 }
  0x59   : > { %v248_v16 = vadd.s32 %v246_v10, %v244_v8 }
  0x5a   : > { %v271_v23 = vadd.s32 %v270_v19, %v260_v11 }
  0x5b   : > { %v249_v20 = vadd.s32 %v248_v16, %v238_v7 }
  0x5c   : > { %v272_v25 = vadd.s32 %v271_v23, %v262_v18 }
  0x5d   : > { %v250_v24 = vadd.s32 %v249_v20, %v240_v15 }
  0x5e   : > { %v276_v27 = vadd.s32 1, %v272_v25 }
  0x5f   : > { %vm275_vm9 = vc.u32 %v250_v24, %v269_v21  ;;  %v274_v12 = vadd.s32 %v269_v21, %v250_v24 }
  0x60   : > { %v277_v28 = vsel %vm275_vm9, %v276_v27, %v272_v25 }
  0x61   : > { %v278_v29 = vadd.s32 %v277_v28, %v273_v26 }
  0x63   : > { %v279_v31 = vadd.s32 536870912, %v278_v29 }
  0x65   : > { %v280_v32 = vshrl.u32 %v279_v31, 30 }
  0x67   : > { %v281_v33 = vshll.u32 %v280_v32, 30  ;;  %v304_v50 = vsub.s32 4, %v280_v32 }
  0x69   : > { %v282_v34 = vsub.s32 %v278_v29, %v281_v33  ;;  %v305_v53 = vsel %vm182_vm12, %v304_v50, %v280_v32 }
  0x6a   : > { %v307_v56 = vsel %vm181_vm13, 0, %v305_v53 }
  0x6b   : > { %vm283_vm10 = vcmp.lt.s32.totalorder %v282_v34, 0  ;;  %v284_v35 = vsub.s32 0, %v282_v34  ;;  %v324_v61 = vadd.s32 3, %v307_v56 }
  0x6d   : > { %v285_v36 = vsel %vm283_vm10, %v284_v35, %v282_v34  ;;  %v325_v3 = vand.u32 3, %v324_v61 }
  0x6e   : > { %v286_v37 = vclz %v285_v36 }
  0x6f   : > { %vm330_vm14 = vcmp.eq.s32.totalorder %v325_v3, 2  ;;  %vm327_vm15 = vcmp.eq.s32.totalorder %v325_v3, 0  ;;  %vm326_vm0 = vcmp.lt.s32.totalorder %v325_v3, 2 }
  0x70   : > { %v448_v38 = vadd.s32 4294967294, %v286_v37 }
  0x72   : > { %vm449_vm11 = vcmp.lt.s32.totalorder %v448_v38, 0 }
  0x73   : > { %v289_v39 = vsel %vm449_vm11, 0, %v448_v38 }
  0x74   : > { %v290_v40 = vsub.s32 32, %v289_v39  ;;  %v291_v41 = vshll.u32 %v282_v34, %v289_v39  ;;  %v294_v42 = vsub.s32 4294967266, %v289_v39 }
  0x76   : > { %v292_v30 = vshrl.u32 %v274_v12, %v290_v40  ;;  %v295_v43 = vadd.s32 127, %v294_v42 }
  0x78   : > { %v293_v44 = vor.u32 %v292_v30, %v291_v41  ;;  %v296_v45 = vshll.u32 %v295_v43, 23 }
  0x7a   : > { %v297_v46 = vor.u32 4788187, %v296_v45  ;;  %v300_v47 = vcvt.s32.f32 %v293_v44 }
  0x7c   : > { %v298_v48 = vand.u32 2147483647, %v297_v46 }
  0x7e   : > { %v301_v49 = vmul.f32 %v300_v47, %v298_v48 }
  0x80   : > { %v302_v51 = vxor.u32 2147483648, %v301_v49 }
  0x82   : > { %v303_v52 = vsel %vm182_vm12, %v302_v51, %v301_v49 }
  0x83   : > { %v306_v54 = vsel %vm181_vm13, %v765_v2, %v303_v52 }
  0x84   : > { %v308_v55 = vmul.f32 %v306_v54, %v306_v54 }
  0x86   : > { %v309_v57 = vmul.f32 -0.001358992, %v308_v55  ;;  %v316_v58 = vmul.f32 -0.00019511016, %v308_v55 }
  0x88   : > { %v310_v59 = vadd.f32 0.041655596, %v309_v57  ;;  %v317_v60 = vadd.f32 0.008332121, %v316_v58 }
  0x8a   : > { %v311_v62 = vmul.f32 %v310_v59, %v308_v55  ;;  %v318_v63 = vmul.f32 %v317_v60, %v308_v55 }
  0x8c   : > { %v312_v0 = vadd.f32 -0.4999988, %v311_v62  ;;  %v319_v1 = vadd.f32 -0.16666654, %v318_v63 }
  0x8e   : > { %v313_v5 = vmul.f32 %v312_v0, %v308_v55  ;;  %v320_v4 = vmul.f32 %v319_v1, %v308_v55 }
  0x90   : > { %v314_v6 = vadd.f32 1.0, %v313_v5  ;;  %v321_v7 = vadd.f32 1.0, %v320_v4 }
  0x92   : > { %v322_v8 = vmul.f32 %v321_v7, %v306_v54  ;;  %v331_v9 = vxor.u32 2147483648, %v314_v6 }
  0x94   : > { %v328_v10 = vxor.u32 2147483648, %v322_v8  ;;  %v332_v11 = vsel %vm330_vm14, %v331_v9, %v322_v8 }
  0x96   : > { %v329_v13 = vsel %vm327_vm15, %v314_v6, %v328_v10 }
  0x97   : > { %v333_v15 = vsel %vm326_vm0, %v329_v13, %v332_v11 }
  0x98   : > { %v334_v16 = vsel %vm323_vm1, nan, %v333_v15 }
  0x99   : > { %v336_v17 = vmul.f32 %v335_v14, %v334_v16 }
  0x9b   : > { %337 = vst [vmem:[%s174_s8] sm:$0xff] %v336_v17 }
  0x9c   : > { %590 = shalt.err (!%p587_p11)
}
  0x9d   : > { %460 = dma.vmem_to_hbm [thread:$0]  (%p724_p3), %s352_s13, 128, %s354_s14, %s339_s17  }
  0x9e PF: > { %s365_s27 = sand.u32 1, %s621_s9   ;;  %p854_p12 = scmp.ge.s32.totalorder %s633_s12, 2 }
  0x9f   : > { %s366_s30 = scalar_lea.sflag [#allocation4], %s365_s27 }
  0xa0   : > { %p471_p13 = pnand %p854_p12, %p693_p6 }
  0xa2   : > { %p472_p0 = pneg %p471_p13 }
  0xa4   : > { %616 = dma.done.wait (%p472_p0), %s366_s30, 128  }
  0xa5   : > { %618 = vsyncadd (%p472_p0), %s366_s30, 4294967168  ;;  %p16_p5 = scmp.ge.s32.totalorder %s709_s21, 4   ;;  %s855_s9 = smov %s625_s10 }
  0xa6   : > { %s856_s10 = smov %s629_s11  ;;  %s857_s11 = smov %s719_s25 }
  0xa7   : > { %s858_s12 = smov %s709_s21  ;;  %18 = sbr.rel (!%p16_p5) target bundleno = 6 (0x6), region = 78 }
  0xac   :  { %372 = vsyncpa [#allocation3], 1 }
  0xad   :  { %374 = vsyncpa [#allocation3 + $0x1], 1 }
  0xae   :  { %375 = vsyncpa [#allocation4], 1 }
  0xaf   :  { %377 = vsyncpa [#allocation4 + $0x1], 1 }
  0xb0   :  { %378 = vsyncpa [#allocation5], 1 }
  0xb1   :  { %380 = vsyncpa [#allocation5 + $0x1], 1 }

</bundles_post_ra>
